<compile_context>
chip_gen: v7x
topology: tpu7x:2x2x1
jax: 0.10.0
libtpu: 0.0.40
codegen_flags: <defaults>
</compile_context>

<pallas_src>
import functools

import jax
import jax.numpy as jnp
from jax.experimental import pallas as pl
from jax.experimental.pallas import tpu as pltpu


def _flashatt_kernel(w_ref, kc_ref, q_ref, o_ref, *, n_chunks, tiles_per_step):
    """One grid step: `tiles_per_step` query lane-tiles against all keys.

    w_ref  : (8, p)           lane-dense weights; row0 = valid-key mask (1/0),
                              row1 = v (zero padded), rows 2..7 = 0.
    kc_ref : (128, n_chunks)  keys; column c holds keys [c*128, (c+1)*128).
    q_ref  : (rows, 128)      one 128-wide query lane-tile per sublane row.
    o_ref  : (rows, 128)      output, same layout as q_ref.
    """
    # Padding rows are discarded by the wrapper; zero them for hygiene.
    o_ref[...] = jnp.zeros_like(o_ref)

    # Analytic per-query row max of the rank-1 scores q_i * k_j: attained at
    # kmax or kmin of the zero-padded keys.  This equals the Triton reference's
    # max over the zero-padded score row (softmax is shift invariant anyway),
    # and keeps every exp argument <= 0.
    k_all = kc_ref[...]                                        # (128, NC)
    kmax = jnp.max(jnp.max(k_all, axis=0, keepdims=True), axis=1, keepdims=True)
    kmin = jnp.min(jnp.min(k_all, axis=0, keepdims=True), axis=1, keepdims=True)

    def q_tile_body(qt, carry):
        q = q_ref[pl.ds(qt, 1), :]                             # (1, 128) lane-dense
        row_max = jnp.maximum(q * kmax, q * kmin)              # (1, 128)

        # acc row0 = softmax denominator, row1 = sum_j softmax_j * v_j.
        acc = jnp.zeros((8, 128), jnp.float32)
        for c in range(n_chunks):                              # static, <= 8
            k_col = kc_ref[:, c:c + 1]                         # (128, 1) key column
            e = jnp.exp(k_col * q - row_max)                   # (128, 128), EUP
            wc = w_ref[:, c * 128:(c + 1) * 128]               # (8, 128) [mask; v; 0..]
            # den/num reduction on the (otherwise idle) MXU; padded keys have
            # mask=0 and v=0, so they contribute nothing -> no select needed.
            acc = acc + jnp.dot(wc, e,
                                preferred_element_type=jnp.float32,
                                precision=jax.lax.Precision.HIGHEST)

        den = acc[0:1, :]
        num = acc[1:2, :]
        den = jnp.where(den > 0.0, den, 1.0)                   # reference's guard
        inv = pl.reciprocal(den, approx=True)                  # EUP reciprocal
        inv = inv * (2.0 - den * inv)                          # Newton -> f32 accuracy
        o_ref[pl.ds(qt, 1), :] = num * inv                     # lane-dense store
        return carry

    # fori_loop (not a Python for) so query-tile live ranges stay bounded.
    jax.lax.fori_loop(0, tiles_per_step, q_tile_body, 0)


@jax.jit
def flashatt(q: jax.Array, k: jax.Array, v: jax.Array) -> jax.Array:
    n = q.shape[0]
    num_q_tiles = max(1, -(-n // 128))
    p = num_q_tiles * 128                                      # lane-aligned length
    n_chunks = num_q_tiles

    # 2 grid steps (one per TensorCore on v7x) when the tile count splits
    # evenly; otherwise a single step (v5e/v6e are single-core anyway).
    n_steps = 2 if (num_q_tiles % 2 == 0 and num_q_tiles >= 2) else 1
    tiles_per_step = num_q_tiles // n_steps
    rows_per_step = ((tiles_per_step + 7) // 8) * 8            # sublane-aligned block

    pad = p - n
    qp = jnp.pad(q.astype(jnp.float32), (0, pad))
    kp = jnp.pad(k.astype(jnp.float32), (0, pad))
    vp = jnp.pad(v.astype(jnp.float32), (0, pad))

    # Lane-dense weight matrix: row0 = valid-key mask, row1 = v, rows 2..7 = 0.
    mask = jnp.pad(jnp.ones((n,), jnp.float32), (0, pad))
    w = jnp.zeros((8, p), jnp.float32).at[0].set(mask).at[1].set(vp)

    # Keys as per-chunk sublane columns, pre-transposed in the (jitted) wrapper
    # so the kernel never transposes: kcol[i, c] = k[c*128 + i].
    kcol = kp.reshape(n_chunks, 128).T                         # (128, n_chunks)

    # Queries: one 128-wide lane tile per sublane row, grouped per grid step
    # and padded to an 8-row (sublane-aligned) block.
    q2d = qp.reshape(n_steps, tiles_per_step, 128)
    q2d = jnp.pad(q2d, ((0, 0), (0, rows_per_step - tiles_per_step), (0, 0)))
    q2d = q2d.reshape(n_steps * rows_per_step, 128)

    out2d = pl.pallas_call(
        functools.partial(_flashatt_kernel, n_chunks=n_chunks,
                          tiles_per_step=tiles_per_step),
        out_shape=jax.ShapeDtypeStruct((n_steps * rows_per_step, 128),
                                       jnp.float32),
        grid=(n_steps,),
        in_specs=[
            pl.BlockSpec((8, p), lambda i: (0, 0)),                # weights (resident)
            pl.BlockSpec((128, n_chunks), lambda i: (0, 0)),       # key columns (resident)
            pl.BlockSpec((rows_per_step, 128), lambda i: (i, 0)),  # query tiles
        ],
        out_specs=pl.BlockSpec((rows_per_step, 128), lambda i: (i, 0)),
        compiler_params=pltpu.CompilerParams(
            dimension_semantics=("parallel",)),                    # 2 TCs on v7x
    )(w, kcol, q2d)

    out = out2d.reshape(n_steps, rows_per_step, 128)[:, :tiles_per_step]
    return out.reshape(p)[:n]


def _reference(q, k, v):
    scores = q[:, None] * k[None, :]
    scores = scores - jnp.max(scores, axis=1, keepdims=True)
    e = jnp.exp(scores)
    s = jnp.sum(e, axis=1, keepdims=True)
    return jnp.sum((e / s) * v[None, :], axis=1)


if __name__ == "__main__":
    key = jax.random.PRNGKey(0)
    kq, kk, kv = jax.random.split(key, 3)

    seq = 8  # small sequence; q, k, v are 1-D float32 vectors
    q = jax.random.normal(kq, (seq,), dtype=jnp.float32)
    k = jax.random.normal(kk, (seq,), dtype=jnp.float32)
    v = jax.random.normal(kv, (seq,), dtype=jnp.float32)

    out = jax.block_until_ready(flashatt(q, k, v))
    ref = _reference(q, k, v)
    assert out.shape == (seq,) and out.dtype == jnp.float32
    assert jnp.allclose(out, ref, atol=1e-5, rtol=1e-4), (out, ref)

    # Extra sanity checks: 2-step parallel path (256 -> even tile count) and
    # multi-tile + padded-last-tile path (300 -> 3 tiles, single step).
    for seq2 in (256, 300):
        q2 = jax.random.normal(kq, (seq2,), dtype=jnp.float32)
        k2 = jax.random.normal(kk, (seq2,), dtype=jnp.float32)
        v2 = jax.random.normal(kv, (seq2,), dtype=jnp.float32)
        out2 = jax.block_until_ready(flashatt(q2, k2, v2))
        assert jnp.allclose(out2, _reference(q2, k2, v2), atol=1e-5, rtol=1e-4)

    print("KERNEL_OK")
</pallas_src>

<mosaic_0001>
module attributes {stable_mosaic.version = 11 : i64} {
  func.func @_flashatt_kernel(%arg0: i32, %arg1: memref<8x128xf32, #tpu.memory_space<vmem>>, %arg2: memref<128x1xf32, #tpu.memory_space<vmem>>, %arg3: memref<8x128xf32, #tpu.memory_space<vmem>>, %arg4: memref<8x128xf32, #tpu.memory_space<vmem>>) attributes {dimension_semantics = [#tpu.dimension_semantics<parallel>], iteration_bounds = array<i64: 1>, scalar_prefetch = 0 : i64, scratch_operands = 0 : i64, tpu.core_type = #tpu.core_type<tc>, window_params = [{pipeline_mode = #tpu.pipeline_mode<synchronous>, transform_indices = @transform_0, window_bounds = array<i64: 8, 128>}, {pipeline_mode = #tpu.pipeline_mode<synchronous>, transform_indices = @transform_1, window_bounds = array<i64: 128, 1>}, {transform_indices = @transform_2, window_bounds = array<i64: 8, 128>}, {transform_indices = @transform_3, window_bounds = array<i64: 8, 128>}]} {
    %cst = arith.constant 0.000000e+00 : f32
    %0 = vector.broadcast %cst : f32 to vector<8x128xf32>
    %c0 = arith.constant 0 : index
    %c0_0 = arith.constant 0 : index
    %1 = vector.load %arg4[%c0, %c0_0] : memref<8x128xf32, #tpu.memory_space<vmem>>, vector<8x128xf32>
    tpu.vector_store %arg4[%c0, %c0_0], %0 {strides = array<i32>} : memref<8x128xf32, #tpu.memory_space<vmem>>, vector<8x128xf32>,
    %c0_1 = arith.constant 0 : index
    %c0_2 = arith.constant 0 : index
    %2 = vector.load %arg2[%c0_1, %c0_2] : memref<128x1xf32, #tpu.memory_space<vmem>>, vector<128x1xf32>
    %cst_3 = arith.constant dense<0xFF800000> : vector<1xf32>
    %3 = vector.multi_reduction <maximumf>, %2, %cst_3 [0] : vector<128x1xf32> to vector<1xf32>
    %4 = vector.shape_cast %3 : vector<1xf32> to vector<1x1xf32>
    %cst_4 = arith.constant dense<0xFF800000> : vector<1xf32>
    %5 = vector.multi_reduction <maximumf>, %4, %cst_4 [1] : vector<1x1xf32> to vector<1xf32>
    %6 = vector.shape_cast %5 : vector<1xf32> to vector<1x1xf32>
    %cst_5 = arith.constant dense<0x7F800000> : vector<1xf32>
    %7 = vector.multi_reduction <minimumf>, %2, %cst_5 [0] : vector<128x1xf32> to vector<1xf32>
    %8 = vector.shape_cast %7 : vector<1xf32> to vector<1x1xf32>
    %cst_6 = arith.constant dense<0x7F800000> : vector<1xf32>
    %9 = vector.multi_reduction <minimumf>, %8, %cst_6 [1] : vector<1x1xf32> to vector<1xf32>
    %10 = vector.shape_cast %9 : vector<1xf32> to vector<1x1xf32>
    %c0_i32 = arith.constant 0 : i32
    %11 = arith.index_cast %c0_i32 : i32 to index
    %c0_7 = arith.constant 0 : index
    %12 = vector.load %arg3[%11, %c0_7] : memref<8x128xf32, #tpu.memory_space<vmem>>, vector<1x128xf32>
    %13 = vector.broadcast %6 : vector<1x1xf32> to vector<1x128xf32>
    %14 = arith.mulf %12, %13 : vector<1x128xf32>
    %15 = vector.broadcast %10 : vector<1x1xf32> to vector<1x128xf32>
    %16 = arith.mulf %12, %15 : vector<1x128xf32>
    %17 = arith.maximumf %14, %16 : vector<1x128xf32>
    %cst_8 = arith.constant 0.000000e+00 : f32
    %18 = vector.broadcast %cst_8 : f32 to vector<8x128xf32>
    %c0_9 = arith.constant 0 : index
    %c0_10 = arith.constant 0 : index
    %19 = vector.load %arg2[%c0_9, %c0_10] : memref<128x1xf32, #tpu.memory_space<vmem>>, vector<128x1xf32>
    %20 = vector.broadcast %19 : vector<128x1xf32> to vector<128x128xf32>
    %21 = vector.broadcast %12 : vector<1x128xf32> to vector<128x128xf32>
    %22 = arith.mulf %20, %21 : vector<128x128xf32>
    %23 = vector.broadcast %17 : vector<1x128xf32> to vector<128x128xf32>
    %24 = arith.subf %22, %23 : vector<128x128xf32>
    %25 = math.exp %24 : vector<128x128xf32>
    %c0_11 = arith.constant 0 : index
    %c0_12 = arith.constant 0 : index
    %26 = vector.load %arg1[%c0_11, %c0_12] : memref<8x128xf32, #tpu.memory_space<vmem>>, vector<8x128xf32>
    %cst_13 = arith.constant dense<0.000000e+00> : vector<8x128xf32>
    %27 = tpu.matmul %26, %25, %cst_13 {dimension_numbers = #tpu.dot_dimension_numbers<[1], [0], [0], [1], [0, 0, 1, 1], [], []>, precision = #tpu.contract_precision<fp32>} : vector<8x128xf32>, vector<128x128xf32>, vector<8x128xf32> -> vector<8x128xf32>
    %28 = arith.addf %18, %27 : vector<8x128xf32>
    %29 = vector.extract_strided_slice %28 {offsets = [0, 0], sizes = [1, 128], strides = [1, 1]} : vector<8x128xf32> to vector<1x128xf32>
    %30 = vector.extract_strided_slice %28 {offsets = [1, 0], sizes = [1, 128], strides = [1, 1]} : vector<8x128xf32> to vector<1x128xf32>
    %cst_14 = arith.constant 0.000000e+00 : f32
    %31 = vector.broadcast %cst_14 : f32 to vector<1x128xf32>
    %32 = arith.cmpf ogt, %29, %31 : vector<1x128xf32>
    %cst_15 = arith.constant 1.000000e+00 : f32
    %33 = vector.broadcast %cst_15 : f32 to vector<1x128xf32>
    %34 = arith.select %32, %29, %33 : vector<1x128xi1>, vector<1x128xf32>
    %35 = tpu.reciprocal %34 {approx = true} : vector<1x128xf32> -> vector<1x128xf32>
    %36 = arith.mulf %34, %35 : vector<1x128xf32>
    %cst_16 = arith.constant 2.000000e+00 : f32
    %37 = vector.broadcast %cst_16 : f32 to vector<1x128xf32>
    %38 = arith.subf %37, %36 : vector<1x128xf32>
    %39 = arith.mulf %35, %38 : vector<1x128xf32>
    %40 = arith.mulf %30, %39 : vector<1x128xf32>
    %41 = arith.index_cast %c0_i32 : i32 to index
    %c0_17 = arith.constant 0 : index
    %42 = vector.load %arg4[%41, %c0_17] : memref<8x128xf32, #tpu.memory_space<vmem>>, vector<1x128xf32>
    tpu.vector_store %arg4[%41, %c0_17], %40 {strides = array<i32>} : memref<8x128xf32, #tpu.memory_space<vmem>>, vector<1x128xf32>,
    %c1_i32 = arith.constant 1 : i32
    return
  }
  func.func @transform_0(%arg0: i32) -> (i32, i32) {
    %c0_i32 = arith.constant 0 : i32
    %c0_i32_0 = arith.constant 0 : i32
    %c0_i32_1 = arith.constant 0 : i32
    return %c0_i32, %c0_i32_0 : i32, i32
  }
  func.func @transform_1(%arg0: i32) -> (i32, i32) {
    %c0_i32 = arith.constant 0 : i32
    %c0_i32_0 = arith.constant 0 : i32
    %c0_i32_1 = arith.constant 0 : i32
    return %c0_i32, %c0_i32_0 : i32, i32
  }
  func.func @transform_2(%arg0: i32) -> (i32, i32) {
    %c0_i32 = arith.constant 0 : i32
    %c0_i32_0 = arith.constant 0 : i32
    return %arg0, %c0_i32 : i32, i32
  }
  func.func @transform_3(%arg0: i32) -> (i32, i32) {
    %c0_i32 = arith.constant 0 : i32
    %c0_i32_0 = arith.constant 0 : i32
    return %arg0, %c0_i32 : i32, i32
  }
}

</mosaic_0001>

<bundles_post_ra>
// kernel: flashatt.1
= control target key start
LH: loop header
LB: loop body
LE: loop exit
PB: predicated region body
PF: predicated region fallthrough
CT: control target
= control target key end

     0   :  { %vm31_vm0 = vcmask 7168   ;;  %v1434_v0 = vmov 0   ;;  %vm1436_vm1 = vmmov 0   ;;  %s1942_s1 = inlined_call_operand.vmem [shape: f32[128,1], index: 1, kind: input, shape index: {}]   ;;  %s1943_s2 = inlined_call_operand.vmem [shape: f32[8,128], index: 2, kind: input, shape index: {}]   ;;  %s1944_s0 = inlined_call_operand.vmem [shape: f32[8,128], index: 0, kind: input, shape index: {}]   ;;  %s1945_s3 = inlined_call_operand.vmem [shape: f32[8,128], index: 3, kind: output, shape index: {}]  }
   0x1   :  { %1399 = vset.pattern.permute.xlu1 %v1434_v0  ;;  %v15_v1 = vld [vmem:[%s1942_s1] sm:$0xff]  ;;  %1398 = vset.pattern.permute.xlu0 %v1434_v0  ;;  %v16_v8 = vld [vmem:[%s1942_s1 + $0x8] sm:$0xff]  ;;  %v18_v13 = vld [vmem:[%s1942_s1 + $0x18] sm:$0xff] }
   0x2   :  { %v1464_v2 = vld [vmem:[%s1942_s1 + $0x20] sm:$0xff]  ;;  %122 = vperm.xlu1 %1399, %v15_v1   ;;  %v32_v11 = vsel %vm31_vm0, %v15_v1, -inf  ;;  %v69_v12 = vsel %vm31_vm0, %v15_v1, inf  ;;  %v20_v14 = vld [vmem:[%s1942_s1 + $0x28] sm:$0xff]  ;;  %v33_v17 = vsel %vm31_vm0, %v16_v8, -inf  ;;  %v70_v18 = vsel %vm31_vm0, %v16_v8, inf }
   0x3   :  { %v1469_v3 = vld [vmem:[%s1942_s1 + $0x40] sm:$0xff]  ;;  %v36_v5 = vsel %vm31_vm0, %v1464_v2, -inf  ;;  %v73_v7 = vsel %vm31_vm0, %v1464_v2, inf  ;;  %v22_v19 = vld [vmem:[%s1942_s1 + $0x38] sm:$0xff]  ;;  %v35_v21 = vsel %vm31_vm0, %v18_v13, -inf  ;;  %v38_v22 = vsel %vm31_vm0, %v20_v14, -inf }
   0x4   :  { %v1474_v4 = vld [vmem:[%s1942_s1 + $0x60] sm:$0xff]  ;;  %v44_v6 = vsel %vm31_vm0, %v1469_v3, -inf  ;;  %v81_v10 = vsel %vm31_vm0, %v1469_v3, inf  ;;  %v37_v15 = vmax.f32 %v32_v11, %v36_v5  ;;  %v74_v16 = vmin.f32 %v69_v12, %v73_v7  ;;  %v1512_v24 = vld [vmem:[%s1942_s1 + $0x58] sm:$0xff]  ;;  %v1518_v29 = vld [vmem:[%s1942_s1 + $0x10] sm:$0xff] }
   0x5   :  { %v1487_v9 = vsel %vm31_vm0, %v1474_v4, -inf  ;;  %v89_v20 = vsel %vm31_vm0, %v1474_v4, inf  ;;  %v75_v23 = vsel %vm31_vm0, %v20_v14, inf  ;;  %v72_v27 = vsel %vm31_vm0, %v18_v13, inf  ;;  %v1523_v30 = vld [vmem:[%s1942_s1 + $0x78] sm:$0xff]  ;;  %v1528_v32 = vld [vmem:[%s1942_s1 + $0x30] sm:$0xff] }
   0x6   :  { %v45_v25 = vmax.f32 %v37_v15, %v44_v6  ;;  %v82_v26 = vmin.f32 %v74_v16, %v81_v10  ;;  %127 = vperm.xlu1 %1399, %v16_v8   ;;  %v39_v28 = vmax.f32 %v33_v17, %v38_v22  ;;  %v76_v31 = vmin.f32 %v70_v18, %v75_v23  ;;  %v1539_v37 = vld [vmem:[%s1942_s1 + $0x50] sm:$0xff]  ;;  %v24_v41 = vld [vmem:[%s1942_s1 + $0x48] sm:$0xff] }
   0x7   :  { %v42_v33 = vsel %vm31_vm0, %v22_v19, -inf  ;;  %v50_v34 = vsel %vm31_vm0, %v1512_v24, -inf  ;;  %v71_v35 = vsel %vm31_vm0, %v1518_v29, inf  ;;  %v58_v39 = vsel %vm31_vm0, %v1523_v30, -inf  ;;  %v28_v42 = vld [vmem:[%s1942_s1 + $0x68] sm:$0xff]  ;;  %v1554_v43 = vld [vmem:[%s1942_s1 + $0x70] sm:$0xff] }
   0x8   :  { %v53_v36 = vmax.f32 %v45_v25, %v1487_v9  ;;  %v43_v38 = vmax.f32 %v35_v21, %v42_v33  ;;  %v77_v40 = vsel %vm31_vm0, %v1528_v32, inf  ;;  %v79_v45 = vsel %vm31_vm0, %v22_v19, inf }
   0x9   :  { %v78_v44 = vmin.f32 %v71_v35, %v77_v40  ;;  %v85_v46 = vsel %vm31_vm0, %v1539_v37, inf  ;;  %v87_v47 = vsel %vm31_vm0, %v1512_v24, inf  ;;  %v90_v48 = vmin.f32 %v82_v26, %v89_v20 }
   0xa   :  { %137 = vperm.xlu1 %1399, %v18_v13   ;;  %v80_v49 = vmin.f32 %v72_v27, %v79_v45  ;;  %v93_v50 = vsel %vm31_vm0, %v1554_v43, inf  ;;  %v95_v51 = vsel %vm31_vm0, %v1523_v30, inf  ;;  %v46_v53 = vsel %vm31_vm0, %v24_v41, -inf }
   0xb   :  { %v86_v52 = vmin.f32 %v78_v44, %v85_v46  ;;  %v54_v54 = vsel %vm31_vm0, %v28_v42, -inf  ;;  %v83_v55 = vsel %vm31_vm0, %v24_v41, inf  ;;  %v51_v56 = vmax.f32 %v43_v38, %v50_v34 }
   0xc   :  { %v88_v57 = vmin.f32 %v80_v49, %v87_v47  ;;  %v47_v58 = vmax.f32 %v39_v28, %v46_v53  ;;  %v84_v59 = vmin.f32 %v76_v31, %v83_v55  ;;  %v91_v61 = vsel %vm31_vm0, %v28_v42, inf }
   0xd   :  { %v94_v60 = vmin.f32 %v86_v52, %v93_v50  ;;  %v34_v62 = vsel %vm31_vm0, %v1518_v29, -inf  ;;  %v40_v63 = vsel %vm31_vm0, %v1528_v32, -inf  ;;  %v48_v7 = vsel %vm31_vm0, %v1539_v37, -inf }
   0xe   :  { %147 = vperm.xlu1 %1399, %v20_v14   ;;  %v96_v0 = vmin.f32 %v88_v57, %v95_v51  ;;  %v55_v1 = vmax.f32 %v47_v58, %v54_v54  ;;  %v92_v5 = vmin.f32 %v84_v59, %v91_v61  ;;  %v41_v6 = vmax.f32 %v34_v62, %v40_v63 }
   0xf   :  { %v56_v8 = vsel %vm31_vm0, %v1554_v43, -inf  ;;  %v59_v9 = vmax.f32 %v51_v56, %v58_v39 }
  0x10   :  { %v98_v10 = vmin.f32 %v94_v60, %v96_v0  ;;  %v97_v11 = vmin.f32 %v90_v48, %v92_v5  ;;  %v49_v12 = vmax.f32 %v41_v6, %v48_v7  ;;  %v60_v13 = vmax.f32 %v53_v36, %v55_v1 }
  0x12   :  { %157 = vperm.xlu1 %1399, %v22_v19   ;;  %v57_v15 = vmax.f32 %v49_v12, %v56_v8  ;;  %v99_v16 = vmin.f32 %v97_v11, %v98_v10 }
  0x14   :  { %v61_v17 = vmax.f32 %v57_v15, %v59_v9  ;;  %v100_v14 = vrot.slane %v99_v16, 4 }
  0x16   :  { %167 = vperm.xlu1 %1399, %v24_v41   ;;  %v62_v18 = vmax.f32 %v60_v13, %v61_v17  ;;  %v101_v20 = vmin.f32 %v99_v16, %v100_v14 }
  0x18   :  { %v63_v21 = vrot.slane %v62_v18, 4  ;;  %v102_v22 = vrot.slane %v101_v20, 2 }
  0x1a   :  { %v64_v23 = vmax.f32 %v62_v18, %v63_v21  ;;  %177 = vperm.xlu1 %1399, %v1512_v24   ;;  %v103_v26 = vmin.f32 %v101_v20, %v102_v22  ;;  %v1435_v24 = vmov 0.0|0.0  }
  0x1b   :  { %1241 = vmatprep.subr.bf16.mxu1 %v1435_v24  ;;  %1313 = vmatprep.subr.bf16.mxu0 %v1435_v24 }
  0x1c   :  { %v65_v25 = vrot.slane %v64_v23, 2  ;;  %v104_v31 = vrot.slane %v103_v26, 1 }
  0x1e   :  { %v66_v27 = vmax.f32 %v64_v23, %v65_v25  ;;  %187 = vperm.xlu1 %1399, %v28_v42   ;;  %v105_v33 = vmin.f32 %v103_v26, %v104_v31 }
  0x20   :  { %v67_v28 = vrot.slane %v66_v27, 1 }
  0x22   :  { %v68_v19 = vmax.f32 %v66_v27, %v67_v28  ;;  %197 = vperm.xlu1 %1399, %v1523_v30   ;;  %v1437_v30 = vmov 0.0  }
  0x23   :  { %1063 = vmatprep.mubr.msk.f32.mxu1 %vm1436_vm1, %v1437_v30  ;;  %1168 = vmatprep.mubr.msk.f32.mxu0 %vm1436_vm1, %v1437_v30  ;;  %14 = vst [vmem:[%s1945_s3] sm:$0xff] %v1437_v30 }
  0x24   :  { %109 = vperm.xlu0 %1398, %v68_v19  }
  0x28   :  { %115 = vperm.xlu0 %1398, %v105_v33  }
  0x2c   :  { %132 = vperm.xlu0 %1398, %v1518_v29   ;;  %v200_v29 = vlaneseq }
  0x30   :  { %142 = vperm.xlu0 %1398, %v1464_v2  }
  0x34   :  { %152 = vperm.xlu0 %1398, %v1528_v32  }
  0x38   :  { %162 = vperm.xlu0 %1398, %v1469_v3  }
  0x3c   :  { %172 = vperm.xlu0 %1398, %v1539_v37   ;;  %v106_v37 = vld [vmem:[%s1943_s2] sm:$0x1] }
  0x40   :  { %182 = vperm.xlu0 %1398, %v1474_v4   ;;  %v201_v4 = vshrl.u32 %v200_v29, 7 }
  0x42   :  { %v202_v35 = vsub.s32 0, %v201_v4 }
  0x44   :  { %192 = vperm.xlu0 %1398, %v1554_v43   ;;  %v1595_v39 = vrot.slane %v106_v37, %v202_v35 }
  0x81   :  { %v123_v2 = vpop.permute.xlu1 %122 }
  0x82   :  { %v204_v45 = vmul.f32 %v1595_v39, %v123_v2 }
  0x85   :  { %v128_v3 = vpop.permute.xlu1 %127 }
  0x86   :  { %v205_v48 = vmul.f32 %v1595_v39, %v128_v3 }
  0x89   :  { %v138_v32 = vpop.permute.xlu1 %137 }
  0x8a   :  { %v207_v49 = vmul.f32 %v1595_v39, %v138_v32 }
  0x8d   :  { %v148_v36 = vpop.permute.xlu1 %147 }
  0x8e   :  { %v209_v59 = vmul.f32 %v1595_v39, %v148_v36 }
  0x91   :  { %v158_v42 = vpop.permute.xlu1 %157 }
  0x92   :  { %v211_v6 = vmul.f32 %v1595_v39, %v158_v42 }
  0x95   :  { %v168_v54 = vpop.permute.xlu1 %167 }
  0x96   :  { %v213_v13 = vmul.f32 %v1595_v39, %v168_v54 }
  0x99   :  { %v178_v5 = vpop.permute.xlu1 %177 }
  0x9a   :  { %v215_v23 = vmul.f32 %v1595_v39, %v178_v5 }
  0x9d   :  { %v188_v14 = vpop.permute.xlu1 %187 }
  0xa1   :  { %v198_v32 = vpop.permute.xlu1 %197 }
  0xa3   :  { %v110_v34 = vpop.permute.xlu0 %109 }
  0xa4   :  { %v112_v40 = vmul.f32 %v110_v34, %v106_v37  ;;  %v217_v34 = vmul.f32 %v1595_v39, %v188_v14 }
  0xa7   :  { %v116_v38 = vpop.permute.xlu0 %115 }
  0xa8   :  { %v118_v41 = vmul.f32 %v116_v38, %v106_v37 }
  0xaa   :  { %v119_v43 = vmax.f32 %v112_v40, %v118_v41 }
  0xab   :  { %v133_v44 = vpop.permute.xlu0 %132 }
  0xac   :  { %v1598_v46 = vrot.slane %v119_v43, %v202_v35  ;;  %v206_v47 = vmul.f32 %v1595_v39, %v133_v44 }
  0xae   :  { %v226_v50 = vsub.f32 %v206_v47, %v1598_v46  ;;  %v224_v51 = vsub.f32 %v204_v45, %v1598_v46  ;;  %v225_v53 = vsub.f32 %v205_v48, %v1598_v46  ;;  %v227_v56 = vsub.f32 %v207_v49, %v1598_v46 }
  0xaf   :  { %v143_v52 = vpop.permute.xlu0 %142  ;;  %v229_v1 = vsub.f32 %v209_v59, %v1598_v46  ;;  %v231_v12 = vsub.f32 %v211_v6, %v1598_v46  ;;  %v233_v21 = vsub.f32 %v213_v13, %v1598_v46  ;;  %v235_v3 = vsub.f32 %v215_v23, %v1598_v46 }
  0xb0   :  { %v208_v55 = vmul.f32 %v1595_v39, %v143_v52  ;;  %v240_v57 = vmul.f32 1.442695, %v224_v51  ;;  %v244_v58 = vmul.f32 1.442695, %v226_v50  ;;  %v242_v62 = vmul.f32 1.442695, %v225_v53 }
  0xb1   :  { %v246_v0 = vmul.f32 1.442695, %v227_v56  ;;  %v250_v11 = vmul.f32 1.442695, %v229_v1  ;;  %v254_v20 = vmul.f32 1.442695, %v231_v12  ;;  %v237_v44 = vsub.f32 %v217_v34, %v1598_v46 }
  0xb2   :  { %v228_v60 = vsub.f32 %v208_v55, %v1598_v46  ;;  %1400 = vpow2.f32 %v240_v57  ;;  %v258_v2 = vmul.f32 1.442695, %v233_v21  ;;  %v219_v45 = vmul.f32 %v1595_v39, %v198_v32 }
  0xb3   :  { %v153_v61 = vpop.permute.xlu0 %152  ;;  %1402 = vpow2.f32 %v244_v58  ;;  %v262_v47 = vmul.f32 1.442695, %v235_v3  ;;  %v266_v53 = vmul.f32 1.442695, %v237_v44 }
  0xb4   :  { %v210_v63 = vmul.f32 %v1595_v39, %v153_v61  ;;  %v248_v7 = vmul.f32 1.442695, %v228_v60  ;;  %1404 = vpow2.f32 %v242_v62  ;;  %v239_v54 = vsub.f32 %v219_v45, %v1598_v46  ;;  %v272_v62 = vld [vmem:[%s1944_s0] sm:$0xff] }
  0xb5   :  { %1406 = vpow2.f32 %v246_v0  ;;  %v1697_v6 = vand.u32 4294901760, %v272_v62 }
  0xb6   :  { %v230_v8 = vsub.f32 %v210_v63, %v1598_v46  ;;  %1408 = vpow2.f32 %v248_v7  ;;  %v270_v60 = vmul.f32 1.442695, %v239_v54 }
  0xb7   :  { %v163_v9 = vpop.permute.xlu0 %162  ;;  %1410 = vpow2.f32 %v250_v11 }
  0xb8   :  { %v212_v10 = vmul.f32 %v1595_v39, %v163_v9  ;;  %v252_v15 = vmul.f32 1.442695, %v230_v8 }
  0xba   :  { %v232_v16 = vsub.f32 %v212_v10, %v1598_v46  ;;  %1412 = vpow2.f32 %v252_v15  ;;  %v1724_v15 = vsub.f32 %v272_v62, %v1697_v6 }
  0xbb   :  { %v173_v17 = vpop.permute.xlu0 %172  ;;  %1414 = vpow2.f32 %v254_v20 }
  0xbc   :  { %v214_v18 = vmul.f32 %v1595_v39, %v173_v17  ;;  %v1620_v22 = vpop.eup %1400  ;;  %v256_v25 = vmul.f32 1.442695, %v232_v16 }
  0xbd   :  { %v1624_v28 = vpop.eup %1402  ;;  %v274_v19 = vand.u32 4294901760, %v1620_v22 }
  0xbe   :  { %v234_v26 = vsub.f32 %v214_v18, %v1598_v46  ;;  %v1628_v33 = vpop.eup %1404  ;;  %1416 = vpow2.f32 %v256_v25  ;;  %v280_v41 = vand.u32 4294901760, %v1624_v28 }
  0xbf   :  { %v183_v27 = vpop.permute.xlu0 %182  ;;  %v1631_v29 = vpop.eup %1406  ;;  %v277_v4 = vand.u32 4294901760, %v1628_v33  ;;  %1418 = vpow2.f32 %v258_v2  ;;  %v1707_v9 = vsub.f32 %v1620_v22, %v274_v19 }
  0xc0   :  { %v216_v31 = vmul.f32 %v1595_v39, %v183_v27  ;;  %v260_v35 = vmul.f32 1.442695, %v234_v26  ;;  %v283_v42 = vand.u32 4294901760, %v1631_v29  ;;  %v1645_v43 = vpop.eup %1408  ;;  %v1734_v14 = vsub.f32 %v1624_v28, %v280_v41 }
  0xc1   :  { %v1640_v38 = vpack.c.bf16 %v277_v4, %v274_v19  ;;  %v1651_v48 = vpop.eup %1410  ;;  %v286_v51 = vand.u32 4294901760, %v1645_v43  ;;  %v1714_v10 = vsub.f32 %v1628_v33, %v277_v4  ;;  %v367_v18 = vand.u32 4294901760, %v1707_v9 }
  0xc2   :  { %v236_v36 = vsub.f32 %v216_v31, %v1598_v46  ;;  %1420 = vpow2.f32 %v260_v35  ;;  %v289_v55 = vand.u32 4294901760, %v1651_v48  ;;  %v1742_v20 = vsub.f32 %v1631_v29, %v283_v42 }
  0xc3   :  { %v193_v37 = vpop.permute.xlu0 %192  ;;  %1243 = vmatpush3.bf16.msra.mxu1 %v1640_v38  ;;  %1315 = vmatpush3.bf16.msra.mxu0 %v1640_v38  ;;  %1422 = vpow2.f32 %v262_v47  ;;  %v374_v23 = vand.u32 4294901760, %v1714_v10  ;;  %v356_v26 = vand.u32 4294901760, %v1724_v15  ;;  %v1761_v31 = vsub.f32 %v1645_v43, %v286_v51 }
  0xc4   :  { %v218_v40 = vmul.f32 %v1595_v39, %v193_v37  ;;  %v264_v49 = vmul.f32 1.442695, %v236_v36  ;;  %1244 = vmatprep.subr.bf16.mxu1 %v1435_v24  ;;  %1316 = vmatprep.subr.bf16.mxu0 %v1435_v24  ;;  %v1660_v39 = vpack.c.bf16 %v283_v42, %v280_v41  ;;  %v1663_v52 = vpop.eup %1412  ;;  %v1675_v58 = vpack.c.bf16 %v289_v55, %v286_v51 }
  0xc5   :  { %v1669_v56 = vpop.eup %1414  ;;  %v368_v19 = vsub.f32 %v1707_v9, %v367_v18  ;;  %v381_v33 = vand.u32 4294901760, %v1734_v14  ;;  %v375_v29 = vsub.f32 %v1714_v10, %v374_v23  ;;  %v388_v32 = vand.u32 4294901760, %v1742_v20 }
  0xc6   :  { %v238_v50 = vsub.f32 %v218_v40, %v1598_v46  ;;  %1424 = vpow2.f32 %v264_v49  ;;  %v292_v46 = vand.u32 4294901760, %v1663_v52  ;;  %v295_v61 = vand.u32 4294901760, %v1669_v56 }
  0xc7   :  { %1246 = vmatpush3.bf16.msra.mxu1 %v1660_v39  ;;  %1318 = vmatpush3.bf16.msra.mxu0 %v1660_v39  ;;  %1426 = vpow2.f32 %v266_v53  ;;  %v357_v4 = vsub.f32 %v1724_v15, %v356_v26  ;;  %v1780_v34 = vsub.f32 %v1651_v48, %v289_v55  ;;  %v369_v37 = vand.u32 4294901760, %v368_v19 }
  0xc8   :  { %v268_v57 = vmul.f32 1.442695, %v238_v50  ;;  %1247 = vmatprep.subr.bf16.mxu1 %v1435_v24  ;;  %1319 = vmatprep.subr.bf16.mxu0 %v1435_v24  ;;  %v1678_v59 = vpop.eup %1416  ;;  %v1692_v0 = vpack.c.bf16 %v295_v61, %v292_v46  ;;  %v1786_v36 = vsub.f32 %v1663_v52, %v292_v46  ;;  %v382_v40 = vsub.f32 %v1734_v14, %v381_v33 }
  0xc9   :  { %v1686_v63 = vpop.eup %1418  ;;  %v298_v1 = vand.u32 4294901760, %v1678_v59  ;;  %v376_v42 = vand.u32 4294901760, %v375_v29  ;;  %v389_v43 = vsub.f32 %v1742_v20, %v388_v32  ;;  %v395_v44 = vand.u32 4294901760, %v1761_v31 }
  0xca   :  { %1428 = vpow2.f32 %v268_v57  ;;  %v301_v7 = vand.u32 4294901760, %v1686_v63  ;;  %v358_v45 = vand.u32 4294901760, %v357_v4  ;;  %v1802_v47 = vsub.f32 %v1669_v56, %v295_v61 }
  0xcb   :  { %1249 = vmatpush3.bf16.msra.mxu1 %v1675_v58  ;;  %1321 = vmatpush3.bf16.msra.mxu0 %v1675_v58  ;;  %1430 = vpow2.f32 %v270_v60  ;;  %v402_v48 = vand.u32 4294901760, %v1780_v34  ;;  %v1808_v49 = vsub.f32 %v1678_v59, %v298_v1  ;;  %v1338_v50 = vpack.c.bf16 %v374_v23, %v367_v18 }
  0xcc   :  { %1250 = vmatprep.subr.bf16.mxu1 %v1435_v24  ;;  %1322 = vmatprep.subr.bf16.mxu0 %v1435_v24  ;;  %v1695_v5 = vpop.eup %1420  ;;  %v1718_v11 = vpack.c.bf16 %v301_v7, %v298_v1  ;;  %v383_v51 = vand.u32 4294901760, %v382_v40  ;;  %v1266_v52 = vpack.c.bf16 %v376_v42, %v369_v37  ;;  %v390_v53 = vand.u32 4294901760, %v389_v43 }
  0xcd   :  { %v1702_v8 = vpop.eup %1422  ;;  %v304_v12 = vand.u32 4294901760, %v1695_v5  ;;  %v396_v54 = vsub.f32 %v1761_v31, %v395_v44  ;;  %v409_v55 = vand.u32 4294901760, %v1786_v36  ;;  %v1817_v56 = vsub.f32 %v1686_v63, %v301_v7 }
  0xce   :  { %v307_v16 = vand.u32 4294901760, %v1702_v8  ;;  %v403_v57 = vsub.f32 %v1780_v34, %v402_v48  ;;  %v416_v46 = vand.u32 4294901760, %v1802_v47  ;;  %v1341_v59 = vpack.c.bf16 %v388_v32, %v381_v33 }
  0xcf   :  { %1252 = vmatpush3.bf16.msra.mxu1 %v1692_v0  ;;  %1324 = vmatpush3.bf16.msra.mxu0 %v1692_v0  ;;  %v423_v60 = vand.u32 4294901760, %v1808_v49  ;;  %v1827_v61 = vsub.f32 %v1695_v5, %v304_v12  ;;  %v1269_v62 = vpack.c.bf16 %v390_v53, %v383_v51  ;;  %v397_v63 = vand.u32 4294901760, %v396_v54 }
  0xd0   :  { %1253 = vmatprep.subr.bf16.mxu1 %v1435_v24  ;;  %1325 = vmatprep.subr.bf16.mxu0 %v1435_v24  ;;  %v1721_v13 = vpop.eup %1424  ;;  %v1748_v21 = vpack.c.bf16 %v307_v16, %v304_v12  ;;  %v410_v1 = vsub.f32 %v1786_v36, %v409_v55  ;;  %v1837_v7 = vsub.f32 %v1702_v8, %v307_v16  ;;  %v404_v18 = vand.u32 4294901760, %v403_v57 }
  0xd1   :  { %v1729_v17 = vpop.eup %1426  ;;  %v310_v22 = vand.u32 4294901760, %v1721_v13  ;;  %v417_v5 = vsub.f32 %v1802_v47, %v416_v46  ;;  %v430_v12 = vand.u32 4294901760, %v1817_v56  ;;  %v1344_v23 = vpack.c.bf16 %v402_v48, %v395_v44 }
  0xd2   :  { %v313_v27 = vand.u32 4294901760, %v1729_v17  ;;  %v1272_v8 = vpack.c.bf16 %v404_v18, %v397_v63  ;;  %v411_v16 = vand.u32 4294901760, %v410_v1  ;;  %v437_v33 = vand.u32 4294901760, %v1827_v61 }
  0xd3   :  { %1255 = vmatpush3.bf16.msra.mxu1 %v1718_v11  ;;  %1327 = vmatpush3.bf16.msra.mxu0 %v1718_v11  ;;  %v1847_v19 = vsub.f32 %v1721_v13, %v310_v22  ;;  %v418_v32 = vand.u32 4294901760, %v417_v5  ;;  %v431_v4 = vsub.f32 %v1817_v56, %v430_v12  ;;  %v444_v37 = vand.u32 4294901760, %v1837_v7 }
  0xd4   :  { %1256 = vmatprep.subr.bf16.mxu1 %v1435_v24  ;;  %1328 = vmatprep.subr.bf16.mxu0 %v1435_v24  ;;  %v1752_v25 = vpop.eup %1428  ;;  %v1771_v2 = vpack.c.bf16 %v313_v27, %v310_v22  ;;  %v1853_v29 = vsub.f32 %v1729_v17, %v313_v27  ;;  %v1347_v13 = vpack.c.bf16 %v416_v46, %v409_v55 }
  0xd5   :  { %v1758_v28 = vpop.eup %1430  ;;  %v316_v3 = vand.u32 4294901760, %v1752_v25  ;;  %v1275_v17 = vpack.c.bf16 %v418_v32, %v411_v16  ;;  %v438_v27 = vsub.f32 %v1827_v61, %v437_v33  ;;  %v451_v42 = vand.u32 4294901760, %v1847_v19 }
  0xd6   :  { %v319_v35 = vand.u32 4294901760, %v1758_v28  ;;  %v432_v44 = vand.u32 4294901760, %v431_v4  ;;  %v458_v48 = vand.u32 4294901760, %v1853_v29  ;;  %v1353_v55 = vpack.c.bf16 %v444_v37, %v437_v33 }
  0xd7   :  { %1258 = vmatpush3.bf16.msra.mxu1 %v1748_v21  ;;  %1330 = vmatpush3.bf16.msra.mxu0 %v1748_v21  ;;  %v1862_v40 = vsub.f32 %v1752_v25, %v316_v3  ;;  %v1350_v25 = vpack.c.bf16 %v430_v12, %v423_v60  ;;  %v452_v51 = vsub.f32 %v1847_v19, %v451_v42 }
  0xd8   :  { %1259 = vmatprep.subr.bf16.mxu1 %v1435_v24  ;;  %1331 = vmatprep.subr.bf16.mxu0 %v1435_v24  ;;  %v1795_v41 = vpack.c.bf16 %v319_v35, %v316_v3  ;;  %v1869_v43 = vsub.f32 %v1758_v28, %v319_v35  ;;  %v459_v35 = vsub.f32 %v1853_v29, %v458_v48 }
  0xd9   :  { %v453_v57 = vand.u32 4294901760, %v452_v51  ;;  %v1356_v63 = vpack.c.bf16 %v458_v48, %v451_v42 }
  0xda   :  { %v472_v53 = vand.u32 4294901760, %v1869_v43 }
  0xdb   :  { %1261 = vmatpush3.bf16.msra.mxu1 %v1771_v2  ;;  %1333 = vmatpush3.bf16.msra.mxu0 %v1771_v2 }
  0xdc   :  { %1262 = vmatprep.subr.bf16.mxu1 %v1435_v24  ;;  %1334 = vmatprep.subr.bf16.mxu0 %v1435_v24 }
  0xdf   :  { %1264 = vmatpush3.bf16.msra.mxu1 %v1795_v41  ;;  %1336 = vmatpush3.bf16.msra.mxu0 %v1795_v41 }
  0xe0   :  { %1265 = vmatprep.subr.bf16.mxu1 %v1435_v24  ;;  %1337 = vmatprep.subr.bf16.mxu0 %v1435_v24 }
  0xe2   :  { %1064 = vmatmul.mubr.f32.vlgmr.msra.gmra.mrb[0].mxu1 %v358_v45  ;;  %1169 = vmatmul.mubr.f32.vlgmr.msra.gmra.mrb[0].mxu0 %v356_v26  ;;  %v424_v26 = vsub.f32 %v1808_v49, %v423_v60  ;;  %v445_v45 = vsub.f32 %v1837_v7, %v444_v37  ;;  %v473_v60 = vsub.f32 %v1869_v43, %v472_v53 }
  0xe3   :  { %1267 = vmatpush3.bf16.msra.mxu1 %v1266_v52  ;;  %1339 = vmatpush3.bf16.msra.mxu0 %v1338_v50  ;;  %v439_v50 = vand.u32 4294901760, %v438_v27  ;;  %v465_v52 = vand.u32 4294901760, %v1862_v40 }
  0xe4   :  { %1268 = vmatprep.subr.bf16.mxu1 %v1435_v24  ;;  %1340 = vmatprep.subr.bf16.mxu0 %v1435_v24  ;;  %v425_v22 = vand.u32 4294901760, %v424_v26  ;;  %v446_v28 = vand.u32 4294901760, %v445_v45  ;;  %v474_v18 = vand.u32 4294901760, %v473_v60  ;;  %v1293_v26 = vpack.c.bf16 %v1742_v20, %v1734_v14 }
  0xe5   :  { %1098 = vmatprep.mubr.msk.f32.mxu1 %vm1436_vm1, %v1437_v30  ;;  %1203 = vmatprep.mubr.msk.f32.mxu0 %vm1436_vm1, %v1437_v30  ;;  %v466_v46 = vsub.f32 %v1862_v40, %v465_v52  ;;  %v1359_v12 = vpack.c.bf16 %v472_v53, %v465_v52 }
  0xe6   :  { %v1278_v3 = vpack.c.bf16 %v432_v44, %v425_v22  ;;  %v1281_v54 = vpack.c.bf16 %v446_v28, %v439_v50 }
  0xe7   :  { %1270 = vmatpush3.bf16.msra.mxu1 %v1269_v62  ;;  %1342 = vmatpush3.bf16.msra.mxu0 %v1341_v59  ;;  %v460_v59 = vand.u32 4294901760, %v459_v35  ;;  %v467_v1 = vand.u32 4294901760, %v466_v46 }
  0xe8   :  { %1271 = vmatprep.subr.bf16.mxu1 %v1435_v24  ;;  %1343 = vmatprep.subr.bf16.mxu0 %v1435_v24 }
  0xe9   :  { %v1284_v62 = vpack.c.bf16 %v460_v59, %v453_v57  ;;  %v1287_v5 = vpack.c.bf16 %v474_v18, %v467_v1 }
  0xeb   :  { %1273 = vmatpush3.bf16.msra.mxu1 %v1272_v8  ;;  %1345 = vmatpush3.bf16.msra.mxu0 %v1344_v23  ;;  %v1290_v23 = vpack.c.bf16 %v1714_v10, %v1707_v9  ;;  %v1299_v9 = vpack.c.bf16 %v1802_v47, %v1786_v36  ;;  %v1311_v10 = vpack.c.bf16 %v1869_v43, %v1862_v40 }
  0xec   :  { %1274 = vmatprep.subr.bf16.mxu1 %v1435_v24  ;;  %1346 = vmatprep.subr.bf16.mxu0 %v1435_v24 }
  0xef   :  { %1276 = vmatpush3.bf16.msra.mxu1 %v1275_v17  ;;  %1348 = vmatpush3.bf16.msra.mxu0 %v1347_v13 }
  0xf0   :  { %1277 = vmatprep.subr.bf16.mxu1 %v1435_v24  ;;  %1349 = vmatprep.subr.bf16.mxu0 %v1435_v24 }
  0xf3   :  { %1279 = vmatpush3.bf16.msra.mxu1 %v1278_v3  ;;  %1351 = vmatpush3.bf16.msra.mxu0 %v1350_v25 }
  0xf4   :  { %1280 = vmatprep.subr.bf16.mxu1 %v1435_v24  ;;  %1352 = vmatprep.subr.bf16.mxu0 %v1435_v24 }
  0xf7   :  { %1282 = vmatpush3.bf16.msra.mxu1 %v1281_v54  ;;  %1354 = vmatpush3.bf16.msra.mxu0 %v1353_v55 }
  0xf8   :  { %1283 = vmatprep.subr.bf16.mxu1 %v1435_v24  ;;  %1355 = vmatprep.subr.bf16.mxu0 %v1435_v24 }
  0xfb   :  { %1285 = vmatpush3.bf16.msra.mxu1 %v1284_v62  ;;  %1357 = vmatpush3.bf16.msra.mxu0 %v1356_v63 }
  0xfc   :  { %1286 = vmatprep.subr.bf16.mxu1 %v1435_v24  ;;  %1358 = vmatprep.subr.bf16.mxu0 %v1435_v24 }
  0xff   :  { %1288 = vmatpush3.bf16.msra.mxu1 %v1287_v5  ;;  %1360 = vmatpush3.bf16.msra.mxu0 %v1359_v12 }
 0x100   :  { %1289 = vmatprep.subr.bf16.mxu1 %v1435_v24  ;;  %1361 = vmatprep.subr.bf16.mxu0 %v1435_v24 }
 0x102   :  { %1099 = vmatmul.mubr.f32.vlgmr.msra.gmra.mrb[0].mxu1 %v1697_v6  ;;  %1204 = vmatmul.mubr.f32.vlgmr.msra.gmra.mrb[0].mxu0 %v1697_v6 }
 0x103   :  { %1291 = vmatpush3.bf16.msra.mxu1 %v1290_v23  ;;  %1363 = vmatpush3.bf16.msra.mxu0 %v1640_v38  ;;  %v1296_v38 = vpack.c.bf16 %v1780_v34, %v1761_v31 }
 0x104   :  { %1292 = vmatprep.subr.bf16.mxu1 %v1435_v24  ;;  %1364 = vmatprep.subr.bf16.mxu0 %v1435_v24 }
 0x105   :  { %1133 = vmatprep.mubr.msk.f32.mxu1 %vm1436_vm1, %v1437_v30  ;;  %1238 = vmatprep.mubr.msk.f32.mxu0 %vm1436_vm1, %v1437_v30 }
 0x107   :  { %1294 = vmatpush3.bf16.msra.mxu1 %v1293_v26  ;;  %1366 = vmatpush3.bf16.msra.mxu0 %v1660_v39  ;;  %v1302_v39 = vpack.c.bf16 %v1817_v56, %v1808_v49 }
 0x108   :  { %1295 = vmatprep.subr.bf16.mxu1 %v1435_v24  ;;  %1367 = vmatprep.subr.bf16.mxu0 %v1435_v24 }
 0x10b   :  { %1297 = vmatpush3.bf16.msra.mxu1 %v1296_v38  ;;  %1369 = vmatpush3.bf16.msra.mxu0 %v1675_v58  ;;  %v1305_v58 = vpack.c.bf16 %v1837_v7, %v1827_v61 }
 0x10c   :  { %1298 = vmatprep.subr.bf16.mxu1 %v1435_v24  ;;  %1370 = vmatprep.subr.bf16.mxu0 %v1435_v24 }
 0x10f   :  { %1300 = vmatpush3.bf16.msra.mxu1 %v1299_v9  ;;  %1372 = vmatpush3.bf16.msra.mxu0 %v1692_v0  ;;  %v1308_v0 = vpack.c.bf16 %v1853_v29, %v1847_v19 }
 0x110   :  { %1301 = vmatprep.subr.bf16.mxu1 %v1435_v24  ;;  %1373 = vmatprep.subr.bf16.mxu0 %v1435_v24 }
 0x113   :  { %1303 = vmatpush3.bf16.msra.mxu1 %v1302_v39  ;;  %1375 = vmatpush3.bf16.msra.mxu0 %v1718_v11 }
 0x114   :  { %1304 = vmatprep.subr.bf16.mxu1 %v1435_v24  ;;  %1376 = vmatprep.subr.bf16.mxu0 %v1435_v24 }
 0x117   :  { %1306 = vmatpush3.bf16.msra.mxu1 %v1305_v58  ;;  %1378 = vmatpush3.bf16.msra.mxu0 %v1748_v21 }
 0x118   :  { %1307 = vmatprep.subr.bf16.mxu1 %v1435_v24  ;;  %1379 = vmatprep.subr.bf16.mxu0 %v1435_v24 }
 0x11b   :  { %1309 = vmatpush3.bf16.msra.mxu1 %v1308_v0  ;;  %1381 = vmatpush3.bf16.msra.mxu0 %v1771_v2 }
 0x11c   :  { %1310 = vmatprep.subr.bf16.mxu1 %v1435_v24  ;;  %1382 = vmatprep.subr.bf16.mxu0 %v1435_v24 }
 0x11f   :  { %1312 = vmatpush3.bf16.msra.mxu1 %v1311_v10  ;;  %1384 = vmatpush3.bf16.msra.mxu0 %v1795_v41 }
 0x122   :  { %1134 = vmatmul.mubr.f32.vlgmr.msra.gmra.mrb[0].mxu1 %v1724_v15  ;;  %1239 = vmatmul.mubr.f32.vlgmr.msra.gmra.mrb[0].mxu0 %v1697_v6 }
 0x1f5   :  { %v615_v11 = vpop.f32.mrb[0].mxu1  ;;  %v910_v14 = vpop.f32.mrb[0].mxu0 }
 0x1f6   :  { %v1385_v20 = vadd.f32 %v910_v14, %v615_v11  ;;  %v1135_v21 = vpop.f32.mrb[1].mxu1  ;;  %v1240_v24 = vpop.f32.mrb[1].mxu0 }
 0x1f8   :  { %vm914_vm2 = vcmp.gt.f32.partialorder %v1385_v20, 0.0 }
 0x1f9   :  { %v915_v31 = vsel %vm914_vm2, %v1385_v20, 1.0 }
 0x1fa   :  { %1432 = vrcp.f32 %v915_v31 }
 0x204   :  { %v1433_v2 = vpop.eup %1432 }
 0x205   :  { %v917_v34 = vmul.f32 %v1433_v2, %v915_v31 }
 0x207   :  { %v918_v36 = vsub.f32 2.0, %v917_v34 }
 0x209   :  { %v919_v41 = vmul.f32 %v1433_v2, %v918_v36 }
 0x20b   :  { %v921_v15 = vrot.slane %v919_v41, 7 }
 0x20d   :  { %v923_v47 = vmul.f32 %v1385_v20, %v921_v15 }
 0x20f   :  { %924 = vst [vmem:[%s1945_s3 - $0x1] sm:$0x2] %v923_v47 }

</bundles_post_ra>
